<compile_context>
chip_gen: v7x
topology: tpu7x:2x2x1
jax: 0.10.0
libtpu: 0.0.40
codegen_flags: <defaults>
</compile_context>

<pallas_src>
import functools

import jax
import jax.numpy as jnp
from jax.experimental import pallas as pl
from jax.experimental.pallas import tpu as pltpu


def _rope_kernel(pos_ref, w_ref, cos_ref, sin_ref, *, scaling, half, r2):
    """One row-tile of the packed mrope cos/sin tables.

    pos_ref : (tR, r2)        int32  -- r2 packed sequence positions per row
    w_ref   : (r2, r2*half)   f32    -- block-diagonal inv_freq selection matrix
              (shape (1, half) when r2 == 1)
    cos_ref / sin_ref : (tR, r2*2*half) out dtype -- lane-dense packed rows
    """
    # int32 -> f32 cast inside the kernel (exact for |pos| < 2^24).
    pos = pos_ref[...].astype(jnp.float32)
    if r2 == 1:
        # (tR,1) * (1,half) lane/sublane broadcast, exact f32 on the VPU.
        freqs = pos * w_ref[...]
    else:
        # One MXU matmul assembles the lane-dense, NON-duplicated freq rows:
        #   freqs[:, u*half + j] = pos[:, u] * inv_freq[j]
        freqs = jax.lax.dot_general(
            pos, w_ref[...],
            (((1,), (0,)), ((), ())),
            preferred_element_type=jnp.float32,
            precision=jax.lax.Precision.HIGHEST)
    c = jnp.cos(freqs)                 # EUP runs only on non-duplicated lanes
    s = jnp.sin(freqs)
    if scaling != 1.0:                 # static: default rope type => skipped
        c = c * scaling
        s = s * scaling
    if r2 == 1:
        c_out = jnp.concatenate([c, c], axis=-1)
        s_out = jnp.concatenate([s, s], axis=-1)
    else:
        # Duplicate each half-block AFTER the transcendental (emb = [f, f]).
        # Static lane slices + lane concat land on the otherwise-idle XLU.
        cp, sp = [], []
        for u in range(r2):
            cb = c[:, u * half:(u + 1) * half]
            sb = s[:, u * half:(u + 1) * half]
            cp += [cb, cb]
            sp += [sb, sb]
        c_out = jnp.concatenate(cp, axis=-1)
        s_out = jnp.concatenate(sp, axis=-1)
    cos_ref[...] = c_out.astype(cos_ref.dtype)
    sin_ref[...] = s_out.astype(sin_ref.dtype)


def _vmem_budget_bytes():
    """Generation-aware per-step tile budget (stays inside scoped-VMEM defaults)."""
    try:
        cap = pltpu.get_tpu_info().vmem_capacity_bytes
    except Exception:  # query unavailable (e.g. interpret mode) -> conservative
        cap = 64 * 1024 * 1024
    # v5e/v6e (128 MiB): 10 MiB tiles; v7x (64 MiB): 8 MiB tiles.
    return max(4 * 1024 * 1024, min(10 * 1024 * 1024, cap // 8))


def _pick_row_tile(R, FW, DL, out_bytes):
    """Largest multiple-of-8 row tile within the VMEM budget.

    Accounts for the lane-padded int32 pos block (r2 lanes pad to 128), the
    double-buffered cos/sin output blocks, and the f32 temporaries.
    """
    budget = _vmem_budget_bytes()
    per_row = (
        2 * 128 * 4                       # pos block (lane-padded), 2 pipeline bufs
        + 2 * 2 * DL * out_bytes          # cos + sin outputs, double-buffered
        + 4 * (128 + 3 * FW + 2 * DL)     # f32 temps: pos, freqs, cos, sin, dup'd
    )
    max_rows = max(8, budget // per_row)
    if R <= max_rows:
        return R
    return max(8, min((max_rows // 8) * 8, 8192))


def qwen25_vl_rotary_embedding(x, position_ids, inv_freq, attention_scaling=1.0,
                               row_tile=None):
    """Pallas implementation of Qwen2_5_VLRotaryEmbedding.forward.

    x:            any array; only its dtype is used (like the PyTorch module).
    position_ids: (3, B, S) integer (mrope axis first: temporal / h / w)
    inv_freq:     (head_dim // 2,) float32
    returns:      (cos, sin), each (3, B, S, head_dim) in x.dtype
    """
    three, B, S = position_ids.shape
    assert three == 3, "position_ids must have leading mrope dim of size 3"
    half = int(inv_freq.shape[0])
    D = 2 * half
    out_dtype = x.dtype
    out_bytes = jnp.dtype(out_dtype).itemsize

    # r2 positions packed per 128-lane (non-duplicated) freq row.
    if half <= 128 and 128 % half == 0 and S % (128 // half) == 0:
        r2 = 128 // half
    else:
        r2 = 1  # TODO(synk): pad S to a multiple of 128 // half for awkward lengths
    S2 = S // r2
    FW = r2 * half          # lane width of the pre-cos/sin freq rows
    DL = r2 * D             # lane width of the packed output rows (= 2 * FW)
    R = 3 * B * S2          # flattened row count -> single 1-D parallel grid

    # Metadata-only reshape; the int->f32 cast happens inside the kernel.
    pos2 = position_ids.reshape(R, r2).astype(jnp.int32)

    inv_f32 = inv_freq.astype(jnp.float32)
    if r2 == 1:
        w = inv_f32.reshape(1, half)
    else:
        # Block-diagonal selection matrix: w[u, u*half + j] = inv_freq[j].
        w = jnp.kron(jnp.eye(r2, dtype=jnp.float32), inv_f32[None, :])   # (r2, FW)

    if row_tile is None:
        tR = _pick_row_tile(R, FW, DL, out_bytes)
    else:
        tR = int(row_tile)
        assert tR == R or tR % 8 == 0, "row_tile must be a multiple of 8 (or == R)"

    kernel = functools.partial(_rope_kernel, scaling=float(attention_scaling),
                               half=half, r2=r2)

    cos2, sin2 = pl.pallas_call(
        kernel,
        out_shape=(
            jax.ShapeDtypeStruct((R, DL), out_dtype),
            jax.ShapeDtypeStruct((R, DL), out_dtype),
        ),
        grid=(pl.cdiv(R, tR),),          # partial last block handled by masking
        in_specs=[
            pl.BlockSpec((tR, r2), lambda i: (i, 0)),
            pl.BlockSpec(w.shape, lambda i: (0, 0)),
        ],
        out_specs=(
            pl.BlockSpec((tR, DL), lambda i: (i, 0)),
            pl.BlockSpec((tR, DL), lambda i: (i, 0)),
        ),
        compiler_params=pltpu.CompilerParams(
            dimension_semantics=("parallel",),
            vmem_limit_bytes=32 * 1024 * 1024,
        ),
    )(pos2, w)

    # Free, layout-only reshapes back to the module's output shape.
    cos = cos2.reshape(3, B, S, D)
    sin = sin2.reshape(3, B, S, D)
    return cos, sin


if __name__ == "__main__":
    import numpy as np

    def _reference(x, position_ids, inv_freq, attention_scaling=1.0):
        """Pure-JAX mirror of the PyTorch forward (exact f32 outer product)."""
        pos = position_ids.astype(jnp.float32)[..., None]                 # (3,B,S,1)
        freqs = pos * inv_freq.astype(jnp.float32)[None, None, None, :]   # (3,B,S,half)
        emb = jnp.concatenate([freqs, freqs], axis=-1)                    # (3,B,S,D)
        cos = (jnp.cos(emb) * attention_scaling).astype(x.dtype)
        sin = (jnp.sin(emb) * attention_scaling).astype(x.dtype)
        return cos, sin

    key = jax.random.PRNGKey(0)
    k1, k2, k3 = jax.random.split(key, 3)
    rope_theta = 10000.0

    # --- Config 1: small Qwen2_5_VL_LM_Args (dim=256, n_heads=8 -> head_dim=32,
    #     half=16, r2=8), f32 outputs, explicit row_tile=16 -> grid of 3 steps.
    dim, n_heads = 256, 8
    head_dim = dim // n_heads                       # 32
    inv_freq = 1.0 / (rope_theta ** (jnp.arange(0, head_dim, 2,
                                                 dtype=jnp.float32) / head_dim))
    B, S = 2, 64
    position_ids = jax.random.randint(k1, (3, B, S), 0, 128, dtype=jnp.int32)
    x = jax.random.normal(k2, (B, S, dim), dtype=jnp.float32)

    cos, sin = qwen25_vl_rotary_embedding(x, position_ids, inv_freq, 1.0,
                                          row_tile=16)
    cos, sin = jax.block_until_ready((cos, sin))
    cos_r, sin_r = _reference(x, position_ids, inv_freq, 1.0)
    assert cos.shape == (3, B, S, head_dim) and sin.shape == (3, B, S, head_dim)
    assert cos.dtype == x.dtype and sin.dtype == x.dtype
    np.testing.assert_allclose(np.asarray(cos), np.asarray(cos_r),
                               rtol=1e-5, atol=1e-4)
    np.testing.assert_allclose(np.asarray(sin), np.asarray(sin_r),
                               rtol=1e-5, atol=1e-4)

    # --- Config 2: bf16 outputs, auto row tile, attention_scaling != 1.
    x_bf16 = x.astype(jnp.bfloat16)
    cos_b, sin_b = qwen25_vl_rotary_embedding(x_bf16, position_ids, inv_freq, 0.75)
    cos_b, sin_b = jax.block_until_ready((cos_b, sin_b))
    cos_rb, sin_rb = _reference(x_bf16, position_ids, inv_freq, 0.75)
    assert cos_b.dtype == jnp.bfloat16 and sin_b.dtype == jnp.bfloat16
    np.testing.assert_allclose(np.asarray(cos_b).astype(np.float32),
                               np.asarray(cos_rb).astype(np.float32),
                               rtol=0, atol=2e-2)
    np.testing.assert_allclose(np.asarray(sin_b).astype(np.float32),
                               np.asarray(sin_rb).astype(np.float32),
                               rtol=0, atol=2e-2)

    # --- Config 3: production head_dim=128 (half=64 -> r2=2), f32 outputs.
    head_dim2 = 128
    inv_freq2 = 1.0 / (rope_theta ** (jnp.arange(0, head_dim2, 2,
                                                 dtype=jnp.float32) / head_dim2))
    B2, S2 = 1, 32
    pos_ids2 = jax.random.randint(k3, (3, B2, S2), 0, 96, dtype=jnp.int32)
    x2 = jax.random.normal(k2, (B2, S2, head_dim2 * 4), dtype=jnp.float32)
    cos2, sin2 = qwen25_vl_rotary_embedding(x2, pos_ids2, inv_freq2, 1.0)
    cos2, sin2 = jax.block_until_ready((cos2, sin2))
    cos2_r, sin2_r = _reference(x2, pos_ids2, inv_freq2, 1.0)
    assert cos2.shape == (3, B2, S2, head_dim2)
    np.testing.assert_allclose(np.asarray(cos2), np.asarray(cos2_r),
                               rtol=1e-5, atol=1e-4)
    np.testing.assert_allclose(np.asarray(sin2), np.asarray(sin2_r),
                               rtol=1e-5, atol=1e-4)

    print("KERNEL_OK")
</pallas_src>

<mosaic_0001>
module attributes {stable_mosaic.version = 11 : i64} {
  func.func @_rope_kernel(%arg0: i32, %arg1: memref<16x8xi32, #tpu.memory_space<vmem>>, %arg2: memref<8x128xf32, #tpu.memory_space<vmem>>, %arg3: memref<16x256xf32, #tpu.memory_space<vmem>>, %arg4: memref<16x256xf32, #tpu.memory_space<vmem>>) attributes {dimension_semantics = [#tpu.dimension_semantics<parallel>], iteration_bounds = array<i64: 3>, scalar_prefetch = 0 : i64, scratch_operands = 0 : i64, tpu.core_type = #tpu.core_type<tc>, window_params = [{transform_indices = @transform_0, window_bounds = array<i64: 16, 8>}, {pipeline_mode = #tpu.pipeline_mode<synchronous>, transform_indices = @transform_1, window_bounds = array<i64: 8, 128>}, {transform_indices = @transform_2, window_bounds = array<i64: 16, 256>}, {transform_indices = @transform_3, window_bounds = array<i64: 16, 256>}]} {
    %c0 = arith.constant 0 : index
    %c0_0 = arith.constant 0 : index
    %0 = vector.load %arg1[%c0, %c0_0] : memref<16x8xi32, #tpu.memory_space<vmem>>, vector<16x8xi32>
    %1 = arith.sitofp %0 : vector<16x8xi32> to vector<16x8xf32>
    %c0_1 = arith.constant 0 : index
    %c0_2 = arith.constant 0 : index
    %2 = vector.load %arg2[%c0_1, %c0_2] : memref<8x128xf32, #tpu.memory_space<vmem>>, vector<8x128xf32>
    %cst = arith.constant dense<0.000000e+00> : vector<16x128xf32>
    %3 = tpu.matmul %1, %2, %cst {dimension_numbers = #tpu.dot_dimension_numbers<[1], [0], [0], [1], [0, 0, 1, 1], [], []>, precision = #tpu.contract_precision<fp32>} : vector<16x8xf32>, vector<8x128xf32>, vector<16x128xf32> -> vector<16x128xf32>
    %4 = math.cos %3 : vector<16x128xf32>
    %5 = math.sin %3 : vector<16x128xf32>
    %6 = vector.extract_strided_slice %4 {offsets = [0, 0], sizes = [16, 16], strides = [1, 1]} : vector<16x128xf32> to vector<16x16xf32>
    %7 = vector.extract_strided_slice %5 {offsets = [0, 0], sizes = [16, 16], strides = [1, 1]} : vector<16x128xf32> to vector<16x16xf32>
    %8 = vector.extract_strided_slice %4 {offsets = [0, 16], sizes = [16, 16], strides = [1, 1]} : vector<16x128xf32> to vector<16x16xf32>
    %9 = vector.extract_strided_slice %5 {offsets = [0, 16], sizes = [16, 16], strides = [1, 1]} : vector<16x128xf32> to vector<16x16xf32>
    %10 = vector.extract_strided_slice %4 {offsets = [0, 32], sizes = [16, 16], strides = [1, 1]} : vector<16x128xf32> to vector<16x16xf32>
    %11 = vector.extract_strided_slice %5 {offsets = [0, 32], sizes = [16, 16], strides = [1, 1]} : vector<16x128xf32> to vector<16x16xf32>
    %12 = vector.extract_strided_slice %4 {offsets = [0, 48], sizes = [16, 16], strides = [1, 1]} : vector<16x128xf32> to vector<16x16xf32>
    %13 = vector.extract_strided_slice %5 {offsets = [0, 48], sizes = [16, 16], strides = [1, 1]} : vector<16x128xf32> to vector<16x16xf32>
    %14 = vector.extract_strided_slice %4 {offsets = [0, 64], sizes = [16, 16], strides = [1, 1]} : vector<16x128xf32> to vector<16x16xf32>
    %15 = vector.extract_strided_slice %5 {offsets = [0, 64], sizes = [16, 16], strides = [1, 1]} : vector<16x128xf32> to vector<16x16xf32>
    %16 = vector.extract_strided_slice %4 {offsets = [0, 80], sizes = [16, 16], strides = [1, 1]} : vector<16x128xf32> to vector<16x16xf32>
    %17 = vector.extract_strided_slice %5 {offsets = [0, 80], sizes = [16, 16], strides = [1, 1]} : vector<16x128xf32> to vector<16x16xf32>
    %18 = vector.extract_strided_slice %4 {offsets = [0, 96], sizes = [16, 16], strides = [1, 1]} : vector<16x128xf32> to vector<16x16xf32>
    %19 = vector.extract_strided_slice %5 {offsets = [0, 96], sizes = [16, 16], strides = [1, 1]} : vector<16x128xf32> to vector<16x16xf32>
    %20 = vector.extract_strided_slice %4 {offsets = [0, 112], sizes = [16, 16], strides = [1, 1]} : vector<16x128xf32> to vector<16x16xf32>
    %21 = vector.extract_strided_slice %5 {offsets = [0, 112], sizes = [16, 16], strides = [1, 1]} : vector<16x128xf32> to vector<16x16xf32>
    %22 = tpu.concatenate %6, %6, %8, %8, %10, %10, %12, %12, %14, %14, %16, %16, %18, %18, %20, %20 in 1 : vector<16x16xf32>, vector<16x16xf32>, vector<16x16xf32>, vector<16x16xf32>, vector<16x16xf32>, vector<16x16xf32>, vector<16x16xf32>, vector<16x16xf32>, vector<16x16xf32>, vector<16x16xf32>, vector<16x16xf32>, vector<16x16xf32>, vector<16x16xf32>, vector<16x16xf32>, vector<16x16xf32>, vector<16x16xf32> -> vector<16x256xf32>
    %23 = tpu.concatenate %7, %7, %9, %9, %11, %11, %13, %13, %15, %15, %17, %17, %19, %19, %21, %21 in 1 : vector<16x16xf32>, vector<16x16xf32>, vector<16x16xf32>, vector<16x16xf32>, vector<16x16xf32>, vector<16x16xf32>, vector<16x16xf32>, vector<16x16xf32>, vector<16x16xf32>, vector<16x16xf32>, vector<16x16xf32>, vector<16x16xf32>, vector<16x16xf32>, vector<16x16xf32>, vector<16x16xf32>, vector<16x16xf32> -> vector<16x256xf32>
    %c0_3 = arith.constant 0 : index
    %c0_4 = arith.constant 0 : index
    %24 = vector.load %arg3[%c0_3, %c0_4] : memref<16x256xf32, #tpu.memory_space<vmem>>, vector<16x256xf32>
    tpu.vector_store %arg3[%c0_3, %c0_4], %22 {strides = array<i32>} : memref<16x256xf32, #tpu.memory_space<vmem>>, vector<16x256xf32>,
    %c0_5 = arith.constant 0 : index
    %c0_6 = arith.constant 0 : index
    %25 = vector.load %arg4[%c0_5, %c0_6] : memref<16x256xf32, #tpu.memory_space<vmem>>, vector<16x256xf32>
    tpu.vector_store %arg4[%c0_5, %c0_6], %23 {strides = array<i32>} : memref<16x256xf32, #tpu.memory_space<vmem>>, vector<16x256xf32>,
    return
  }
  func.func @transform_0(%arg0: i32) -> (i32, i32) {
    %c0_i32 = arith.constant 0 : i32
    %c0_i32_0 = arith.constant 0 : i32
    return %arg0, %c0_i32 : i32, i32
  }
  func.func @transform_1(%arg0: i32) -> (i32, i32) {
    %c0_i32 = arith.constant 0 : i32
    %c0_i32_0 = arith.constant 0 : i32
    %c0_i32_1 = arith.constant 0 : i32
    return %c0_i32, %c0_i32_0 : i32, i32
  }
  func.func @transform_2(%arg0: i32) -> (i32, i32) {
    %c0_i32 = arith.constant 0 : i32
    %c0_i32_0 = arith.constant 0 : i32
    return %arg0, %c0_i32 : i32, i32
  }
  func.func @transform_3(%arg0: i32) -> (i32, i32) {
    %c0_i32 = arith.constant 0 : i32
    %c0_i32_0 = arith.constant 0 : i32
    return %arg0, %c0_i32 : i32, i32
  }
}

</mosaic_0001>

<bundles_post_ra>
// kernel: tpu_custom_call.1
= control target key start
LH: loop header
LB: loop body
LE: loop exit
PB: predicated region body
PF: predicated region fallthrough
CT: control target
= control target key end

     0   :  { %9 = vsyncpa [#allocation3], 0  ;;  %s2054_s0 = inlined_call_operand.vmem [shape: s32[48,8], index: 0, kind: input, shape index: {}]   ;;  %s2055_s1 = inlined_call_operand.vmem [shape: f32[8,128], index: 1, kind: input, shape index: {}]   ;;  %s2056_s2 = inlined_call_operand.hbm [shape: f32[48,256], index: 2, kind: output, shape index: {0}]   ;;  %s2057_s3 = inlined_call_operand.hbm [shape: f32[48,256], index: 3, kind: output, shape index: {1}]  }
   0x1   :  { %11 = vsyncpa [#allocation3 + $0x1], 0 }
   0x2   :  { %12 = vsyncpa [#allocation5], 0 }
   0x3   :  { %14 = vsyncpa [#allocation5 + $0x1], 0  ;;  %s1691_s12 = smov 0   ;;  %s1693_s13 = smov 0  }
   0x4   :  { %s1695_s14 = smov 0   ;;  %s1697_s15 = smov 0  }
   0x5 LB: > { %s1712_s16 = sadd.s32 4294967295, %s1653_s15   ;;  %s1389_s17 = sadd.s32 4294967294, %s1653_s15   ;;  %s1653_s15 = sphi %s1697_s15, %s2065_s15   ;;  %s1649_s14 = sphi %s1695_s14, %s2064_s14   ;;  %s1645_s13 = sphi %s1693_s13, %s2063_s13   ;;  %s1641_s12 = sphi %s1691_s12, %s2062_s12  }
   0x6   : > { %s1716_s18 = sadd.s32 1, %s1653_s15   ;;  %s74_s19 = sadd.s32 1, %s1649_s14 }
   0x7   : > { %s71_s20 = ssub.s32 %s1653_s15, %s1716_s18  ;;  %p84_p0 = scmp.ne.s32.totalorder %s1649_s14, %s1645_s13 }
   0x8   : > { %p72_p1 = scmp.eq.s32.totalorder %s71_s20, 0  ;;  %p85_p2 = scmp.eq.s32.totalorder %s1712_s16, 2 }
   0x9   : > { %p90_p3 = scmp.ne.s32.totalorder %s1645_s13, %s1641_s12  ;;  %p91_p4 = scmp.eq.s32.totalorder %s1389_s17, 2 }
   0xa   : > { %s1727_s21 = scalar_select %p72_p1, %s1649_s14, %s74_s19  }
   0xb   : > { %p1729_p5 = por %p85_p2, %p84_p0  ;;  %p1733_p6 = por %p91_p4, %p90_p3 }
   0xc   : > { %p1392_p7 = scmp.ge.s32.totalorder %s1653_s15, 1  ;;  %p147_p8 = scmp.lt.s32.totalorder %s1653_s15, 4 }
   0xe   : > { %p148_p9 = pnand %p1392_p7, %p147_p8 }
   0xf   : > { %v188_v0 = vld [vmem:[%s2055_s1] sm:$0xff] (!%p148_p9)  ;;  %s1395_s26 = sshll.u32 (!%p148_p9), %s1712_s16, 1  ;;  %vm189_vm0 = vcmask (!%p148_p9), 64512   ;;  %v1655_v48 = vmov (!%p148_p9), 683565275   ;;  %s1661_s4 = smov (!%p148_p9), 64  }
  0x10   : > { %151 = sbr.rel (%p148_p9) target bundleno = 561 (0x231), region = 28  ;;  %v197_v1 = vand.u32 (!%p148_p9), 4294901760, %v188_v0  ;;  %p177_p10 = scmp.lt.s32.totalorder (!%p148_p9), %s1395_s26, 5  ;;  %v1656_v52 = vmov (!%p148_p9), 2475754826  }
  0x11   : > { %v1657_v54 = vmov (!%p148_p9), 2131351028   ;;  %v1658_v56 = vmov (!%p148_p9), 2102212464   ;;  %v1659_v58 = vmov (!%p148_p9), 920167782  }
  0x12   : > { %1460 = vmatprep.subr.mxu0 (!%p148_p9), %v197_v1  ;;  %1445 = vmatprep.subr.mxu1 (!%p148_p9), %v197_v1  ;;  %v284_v2 = vsub.f32 (!%p148_p9), %v188_v0, %v197_v1  ;;  %s1662_s5 = smov (!%p148_p9), 16   ;;  %s1663_s6 = smov (!%p148_p9), 80  }
  0x13   : > { %1461 = vmatpush3.msra.mxu0 (!%p148_p9), %v197_v1  ;;  %1446 = vmatpush3.msra.mxu1 (!%p148_p9), %v197_v1  ;;  %s1664_s7 = smov (!%p148_p9), 32   ;;  %s1665_s8 = smov (!%p148_p9), 96  }
  0x14   : > { %v285_v3 = vand.u32 (!%p148_p9), 4294901760, %v284_v2  ;;  %s1666_s9 = smov (!%p148_p9), 48   ;;  %s1667_s10 = smov (!%p148_p9), 112  }
  0x15   : > { %s1873_s11 = sand.u32 (!%p148_p9), 1, %s1645_s13   ;;  %s1424_s25 = sshll.u32 (!%p148_p9), %s1712_s16, 9 }
  0x16   : > { %v286_v6 = vsub.f32 (!%p148_p9), %v284_v2, %v285_v3  ;;  %1465 = vmatprep.subr.mxu0 (!%p148_p9), %v285_v3  ;;  %s1393_s17 = sshll.u32 (!%p148_p9), %s1873_s11, 5  ;;  %s1953_s28 = scalar_lea.hbm (!%p148_p9), %s2056_s2, %s1424_s25 }
  0x17   : > { %s2067_s26 = smov (!%p177_p10, %s1395_s26), 5  ;;  %s1893_s19 = scalar_lea.vmem [#allocation2], %s1393_s17 }
  0x18   : > { %s1396_s27 = sshll.u32 %s2067_s26, 3  ;;  %v287_v9 = vand.u32 4294901760, %v286_v6  ;;  %s1917_s20 = scalar_lea.vmem [#allocation4], %s1393_s17 }
  0x19   : > { %s180_s30 = scalar_lea.vmem %s2054_s0, %s1396_s27  ;;  %s1278_s24 = sshll.u32 %s1893_s19, 4  ;;  %s1940_s24 = int_to_ptr.vmem [resolvable:$true] %s1278_s24 }
  0x1a   : > { %v184_v4 = vld [vmem:[%s180_s30] sm:$0xff]  ;;  %v185_v5 = vld [vmem:[%s180_s30 + $0x8] sm:$0xff]  ;;  %1450 = vmatprep.subr.mxu1 %v287_v9  ;;  %s1295_s29 = sshll.u32 %s1917_s20, 4  ;;  %s1259_s30 = scalar_lea.sflag [#allocation3], %s1873_s11  ;;  %s1997_s29 = int_to_ptr.vmem [resolvable:$true] %s1295_s29 }
  0x1b   : > { %v186_v7 = vcvt.s32.f32 %v184_v4  ;;  %v187_v8 = vcvt.s32.f32 %v185_v5 }
  0x1d   : > { %v191_v10 = vsel %vm189_vm0, %v186_v7, 0  ;;  %v194_v11 = vsel %vm189_vm0, %v187_v8, 0 }
  0x1e   : > { %v262_v12 = vand.u32 4294901760, %v191_v10  ;;  %v272_v13 = vand.u32 4294901760, %v194_v11 }
  0x20   : > { %v263_v14 = vsub.f32 %v191_v10, %v262_v12  ;;  %v273_v15 = vsub.f32 %v194_v11, %v272_v13 }
  0x22   : > { %v264_v16 = vand.u32 4294901760, %v263_v14  ;;  %v274_v17 = vand.u32 4294901760, %v273_v15 }
  0x24   : > { %1462 = vmatprep.mubr.f32.mxu0 %v264_v16  ;;  %v265_v18 = vsub.f32 %v263_v14, %v264_v16  ;;  %v275_v19 = vsub.f32 %v273_v15, %v274_v17 }
  0x25   : > { %1463 = vmatmul.mubr.f32.vlgmr.msra.gmra.mrb[0].mxu0 %v274_v17 }
  0x26   : > { %v266_v20 = vand.u32 4294901760, %v265_v18  ;;  %v276_v21 = vand.u32 4294901760, %v275_v19  ;;  %1466 = vmatpush3.msra.mxu0 %v285_v3  ;;  %1467 = vmatprep.mubr.f32.mxu0 %v262_v12 }
  0x27   : > { %1470 = vmatprep.subr.mxu0 %v197_v1 }
  0x28   : > { %1447 = vmatprep.mubr.f32.mxu1 %v266_v20 }
  0x29   : > { %1448 = vmatmul.mubr.f32.vlgmr.msra.gmra.mrb[0].mxu1 %v276_v21 }
  0x2a   : > { %1451 = vmatpush3.msra.mxu1 %v287_v9  ;;  %1452 = vmatprep.mubr.f32.mxu1 %v262_v12 }
  0x2b   : > { %1455 = vmatprep.subr.mxu1 %v284_v2 }
  0x2d   : > { %1468 = vmatmul.mubr.f32.vlgmr.msra.gmra.mrb[0].mxu0 %v272_v13 }
  0x2e   : > { %1471 = vmatpush3.msra.mxu0 %v197_v1  ;;  %1472 = vmatprep.mubr.f32.mxu0 %v262_v12  ;;  %v1660_v1 = vmov 1326507024  }
  0x31   : > { %1453 = vmatmul.mubr.f32.vlgmr.msra.gmra.mrb[0].mxu1 %v272_v13 }
  0x32   : > { %1456 = vmatpush3.msra.mxu1 %v284_v2  ;;  %1457 = vmatprep.mubr.f32.mxu1 %v263_v14 }
  0x35   : > { %1473 = vmatmul.mubr.f32.vlgmr.msra.gmra.mrb[0].mxu0 %v272_v13 }
  0x39   : > { %1458 = vmatmul.mubr.f32.vlgmr.msra.gmra.mrb[0].mxu1 %v273_v15 }
 0x108   : > { %v1474_v22 = vpop.f32.mrb[0].mxu0 }
 0x109   : > { %v675_v23 = vpop.f32.mrb[1].mxu0 }
 0x10c   : > { %v1459_v24 = vpop.f32.mrb[0].mxu1 }
 0x10d   : > { %v1746_v25 = vadd.f32 %v1474_v22, %v1459_v24  ;;  %v434_v26 = vpop.f32.mrb[1].mxu1 }
 0x10e   : > { %v1748_v27 = vadd.f32 %v675_v23, %v434_v26 }
 0x10f   : > { %v788_v28 = vand.u32 2147483647, %v1746_v25  ;;  %v791_v29 = vand.u32 2139095040, %v1746_v25  ;;  %vm790_vm15 = vcmp.lt.s32.totalorder %v1746_v25, 0 }
 0x110   : > { %v688_v30 = vand.u32 2139095040, %v1748_v27  ;;  %v685_v33 = vand.u32 2147483647, %v1748_v27 }
 0x111   : > { %v792_v31 = vshrl.u32 %v791_v29, 23  ;;  %v795_v32 = vand.u32 8388607, %v788_v28  ;;  %vm789_vm0 = vcmp.le.f32.partialorder %v788_v28, 0.7853982 }
 0x112   : > { %v689_v34 = vshrl.u32 %v688_v30, 23  ;;  %v1758_v39 = vand.u32 8388607, %v685_v33 }
 0x113   : > { %v1401_v35 = vadd.s32 4294967169, %v792_v31  ;;  %v796_v38 = vor.u32 8388608, %v795_v32 }
 0x114   : > { %v1397_v36 = vadd.s32 4294967169, %v689_v34  ;;  %v693_v46 = vor.u32 8388608, %v1758_v39 }
 0x115   : > { %v798_v37 = vadd.s32 1, %v1401_v35  ;;  %v1760_v45 = vshll.u32 %v796_v38, 8 }
 0x116   : > { %v695_v40 = vadd.s32 1, %v1397_v36 }
 0x117   : > { %vm799_vm1 = vcmp.gt.s32.totalorder %v798_v37, 0 }
 0x118   : > { %v800_v41 = vsel %vm799_vm1, %v798_v37, 0  ;;  %vm696_vm2 = vcmp.gt.s32.totalorder %v695_v40, 0  ;;  %vm687_vm1 = vcmp.lt.s32.totalorder %v1748_v27, 0 }
 0x119   : > { %v801_v42 = vshrl.u32 %v800_v41, 5  ;;  %v802_v43 = vand.u32 31, %v800_v41  ;;  %v697_v44 = vsel %vm696_vm2, %v695_v40, 0  ;;  %v733_v40 = vshll.u32 %v693_v46, 8 }
 0x11a   : > { %v1763_v50 = vshrl.u32 %v697_v44, 5  ;;  %v699_v51 = vand.u32 31, %v697_v44  ;;  %vm1805_vm2 = vcmp.le.f32.partialorder %v685_v33, 0.7853982 }
 0x11b   : > { %v803_v47 = vsub.s32 32, %v802_v43  ;;  %v805_v49 = vshll.u32 %v1655_v48, %v802_v43  ;;  %v808_v53 = vshll.u32 %v1656_v52, %v802_v43  ;;  %v811_v55 = vshll.u32 %v1657_v54, %v802_v43 }
 0x11c   : > { %v814_v57 = vshll.u32 %v1658_v56, %v802_v43  ;;  %v817_v59 = vshll.u32 %v1659_v58, %v802_v43  ;;  %vm820_vm3 = vcmp.lt.s32.totalorder %v801_v42, 1  ;;  %vm821_vm4 = vcmp.lt.s32.totalorder %v801_v42, 2 }
 0x11d   : > { %v806_v60 = vshrl.u32 %v1656_v52, %v803_v47  ;;  %v809_v61 = vshrl.u32 %v1657_v54, %v803_v47  ;;  %v812_v62 = vshrl.u32 %v1658_v56, %v803_v47  ;;  %v804_v63 = vshrl.u32 %v1655_v48, %v803_v47 }
 0x11e   : > { %v815_v0 = vshrl.u32 %v1659_v58, %v803_v47  ;;  %v818_v2 = vshrl.u32 %v1660_v1, %v803_v47  ;;  %v700_v6 = vsub.s32 32, %v699_v51  ;;  %vm822_vm5 = vcmp.lt.s32.totalorder %v801_v42, 3 }
 0x11f   : > { %v807_v3 = vor.u32 %v806_v60, %v805_v49  ;;  %v810_v4 = vor.u32 %v809_v61, %v808_v53  ;;  %v813_v5 = vor.u32 %v812_v62, %v811_v55  ;;  %vm823_vm6 = vcmp.lt.s32.totalorder %v801_v42, 4 }
 0x120   : > { %v816_v7 = vor.u32 %v815_v0, %v814_v57  ;;  %v819_v8 = vor.u32 %v818_v2, %v817_v59  ;;  %v702_v16 = vshll.u32 %v1655_v48, %v699_v51  ;;  %v703_v19 = vshrl.u32 %v1656_v52, %v700_v6 }
 0x121   : > { %v824_v9 = vsel %vm820_vm3, %v804_v63, %v807_v3  ;;  %v825_v10 = vsel %vm823_vm6, %v813_v5, 2102212464  ;;  %v828_v11 = vsel %vm820_vm3, %v807_v3, %v810_v4  ;;  %v832_v12 = vsel %vm820_vm3, %v810_v4, %v813_v5 }
 0x122   : > { %v826_v13 = vsel %vm822_vm5, %v810_v4, %v825_v10  ;;  %v829_v14 = vsel %vm823_vm6, %v816_v7, 920167782  ;;  %v833_v15 = vsel %vm823_vm6, %v819_v8, 1326507024  ;;  %v705_v20 = vshll.u32 %v1656_v52, %v699_v51 }
 0x123   : > { %v830_v17 = vsel %vm822_vm5, %v813_v5, %v829_v14  ;;  %v834_v18 = vsel %vm822_vm5, %v816_v7, %v833_v15  ;;  %v827_v21 = vsel %vm821_vm4, %v824_v9, %v826_v13  ;;  %v706_v24 = vshrl.u32 %v1657_v54, %v700_v6 }
 0x124   : > { %v831_v22 = vsel %vm821_vm4, %v828_v11, %v830_v17  ;;  %v835_v23 = vsel %vm821_vm4, %v832_v12, %v834_v18  ;;  %v704_v32 = vor.u32 %v703_v19, %v702_v16  ;;  %v708_v35 = vshll.u32 %v1657_v54, %v699_v51 }
 0x125   : > { %v1772_v26 = vmul.u32.u64.low %v1760_v45, %v835_v23  ;;  %v1773_v29 = vmul.u32.u64.high %v1760_v45, %v835_v23, %v1772_v26  ;;  %v1776_v30 = vmul.u32.u64.low %v1760_v45, %v831_v22  ;;  %v1777_v31 = vmul.u32.u64.high %v1760_v45, %v831_v22, %v1776_v30 }
 0x126   : > { %v707_v34 = vor.u32 %v706_v24, %v705_v20  ;;  %v709_v36 = vshrl.u32 %v1658_v56, %v700_v6  ;;  %v711_v37 = vshll.u32 %v1658_v56, %v699_v51  ;;  %v712_v38 = vshrl.u32 %v1659_v58, %v700_v6 }
 0x127   : > { %v715_v39 = vshrl.u32 %v1660_v1, %v700_v6  ;;  %v843_v41 = vmul.u32 %v1760_v45, %v827_v21  ;;  %v701_v42 = vshrl.u32 %v1655_v48, %v700_v6  ;;  %v714_v44 = vshll.u32 %v1659_v58, %v699_v51 }
 0x128   : > { %v710_v43 = vor.u32 %v709_v36, %v708_v35  ;;  %vm845_vm7 = vc.u32 %v1773_v29, %v1776_v30  ;;  %v846_v47 = vadd.s32 1, %v1777_v31  ;;  %v713_v49 = vor.u32 %v712_v38, %v711_v37 }
 0x129   : > { %vm717_vm8 = vcmp.lt.s32.totalorder %v1763_v50, 1  ;;  %v716_v52 = vor.u32 %v715_v39, %v714_v44  ;;  %vm719_vm9 = vcmp.lt.s32.totalorder %v1763_v50, 3  ;;  %vm720_vm10 = vcmp.lt.s32.totalorder %v1763_v50, 4 }
 0x12a   : > { %v725_v53 = vsel %vm717_vm8, %v704_v32, %v707_v34  ;;  %v847_v46 = vsel %vm845_vm7, %v846_v47, %v1777_v31  ;;  %v722_v54 = vsel %vm720_vm10, %v710_v43, 2102212464  ;;  %v726_v45 = vsel %vm720_vm10, %v713_v49, 920167782 }
 0x12b   : > { %v729_v48 = vsel %vm717_vm8, %v707_v34, %v710_v43  ;;  %v848_v55 = vadd.s32 %v847_v46, %v843_v41  ;;  %vm718_vm11 = vcmp.lt.s32.totalorder %v1763_v50, 2  ;;  %v727_v51 = vsel %vm719_vm9, %v710_v43, %v726_v45 }
 0x12c   : > { %v730_v56 = vsel %vm720_vm10, %v716_v52, 1326507024  ;;  %v721_v57 = vsel %vm717_vm8, %v701_v42, %v704_v32  ;;  %v723_v58 = vsel %vm719_vm9, %v707_v34, %v722_v54  ;;  %v728_v59 = vsel %vm718_vm11, %v725_v53, %v727_v51 }
 0x12d   : > { %v731_v60 = vsel %vm719_vm9, %v713_v49, %v730_v56  ;;  %v849_v61 = vadd.s32 536870912, %v848_v55  ;;  %v1787_v63 = vmul.u32.u64.low %v733_v40, %v728_v59  ;;  %v1788_v0 = vmul.u32.u64.high %v733_v40, %v728_v59, %v1787_v63 }
 0x12e   : > { %v732_v62 = vsel %vm718_vm11, %v729_v48, %v731_v60  ;;  %v724_v4 = vsel %vm718_vm11, %v721_v57, %v723_v58  ;;  %v844_v20 = vadd.s32 %v1776_v30, %v1773_v29  ;;  %vm880_vm6 = vweird.f32 %v1746_v25 }
 0x12f   : > { %v1790_v1 = vmul.u32.u64.low %v733_v40, %v732_v62  ;;  %v1791_v2 = vmul.u32.u64.high %v733_v40, %v732_v62, %v1790_v1  ;;  %v850_v3 = vshrl.u32 %v849_v61, 30  ;;  %v743_v6 = vadd.s32 1, %v1788_v0 }
 0x130   : > { %v740_v50 = vmul.u32 %v733_v40, %v724_v4 }
 0x131   : > { %v851_v5 = vshll.u32 %v850_v3, 30  ;;  %vm742_vm12 = vc.u32 %v1791_v2, %v1787_v63  ;;  %v741_v41 = vadd.s32 %v1787_v63, %v1791_v2  ;;  %v874_v54 = vsub.s32 4, %v850_v3 }
 0x132   : > { %v744_v8 = vsel %vm742_vm12, %v743_v6, %v1788_v0 }
 0x133   : > { %v852_v7 = vsub.s32 %v848_v55, %v851_v5  ;;  %v745_v9 = vadd.s32 %v744_v8, %v740_v50  ;;  %v875_v56 = vsel %vm790_vm15, %v874_v54, %v850_v3 }
 0x134   : > { %v877_v58 = vsel %vm789_vm0, 0, %v875_v56 }
 0x135   : > { %v854_v10 = vsub.s32 0, %v852_v7  ;;  %v746_v11 = vadd.s32 536870912, %v745_v9  ;;  %v881_v62 = vand.u32 3, %v877_v58  ;;  %v1088_v0 = vadd.s32 3, %v877_v58 }
 0x137   : > { %v1402_v12 = vmin.u32 %v854_v10, %v852_v7  ;;  %v747_v13 = vshrl.u32 %v746_v11, 30  ;;  %vm886_vm3 = vcmp.eq.s32.totalorder %v881_v62, 2  ;;  %vm883_vm4 = vcmp.eq.s32.totalorder %v881_v62, 0 }
 0x138   : > { %v1089_v6 = vand.u32 3, %v1088_v0  ;;  %vm882_vm5 = vcmp.lt.s32.totalorder %v881_v62, 2 }
 0x139   : > { %v856_v14 = vclz %v1402_v12  ;;  %v748_v15 = vshll.u32 %v747_v13, 30  ;;  %v771_v61 = vsub.s32 4, %v747_v13 }
 0x13a   : > { %vm1091_vm7 = vcmp.eq.s32.totalorder %v1089_v6, 0  ;;  %vm1094_vm8 = vcmp.eq.s32.totalorder %v1089_v6, 2  ;;  %vm1090_vm9 = vcmp.lt.s32.totalorder %v1089_v6, 2 }
 0x13b   : > { %v1403_v16 = vadd.s32 4294967294, %v856_v14  ;;  %v749_v17 = vsub.s32 %v745_v9, %v748_v15  ;;  %v772_v4 = vsel %vm687_vm1, %v771_v61, %v747_v13 }
 0x13d   : > { %vm1404_vm13 = vcmp.lt.s32.totalorder %v1403_v16, 0  ;;  %v751_v19 = vsub.s32 0, %v749_v17 }
 0x13e   : > { %v859_v18 = vsel %vm1404_vm13, 0, %v1403_v16  ;;  %vm777_vm13 = vweird.f32 %v1748_v27 }
 0x13f   : > { %v860_v21 = vsub.s32 32, %v859_v18  ;;  %v864_v22 = vsub.s32 4294967266, %v859_v18  ;;  %v1398_v23 = vmin.u32 %v751_v19, %v749_v17  ;;  %v861_v24 = vshll.u32 %v852_v7, %v859_v18 }
 0x140   : > { %v774_v7 = vsel %vm1805_vm2, 0, %v772_v4 }
 0x141   : > { %v862_v26 = vshrl.u32 %v844_v20, %v860_v21  ;;  %v865_v31 = vadd.s32 127, %v864_v22  ;;  %v753_v32 = vclz %v1398_v23  ;;  %v778_v10 = vand.u32 3, %v774_v7 }
 0x142   : > { %v984_v13 = vadd.s32 3, %v774_v7 }
 0x143   : > { %v863_v34 = vor.u32 %v862_v26, %v861_v24  ;;  %v866_v35 = vshll.u32 %v865_v31, 23  ;;  %v1399_v36 = vadd.s32 4294967294, %v753_v32  ;;  %vm783_vm10 = vcmp.eq.s32.totalorder %v778_v10, 2 }
 0x144   : > { %vm780_vm11 = vcmp.eq.s32.totalorder %v778_v10, 0  ;;  %v985_v20 = vand.u32 3, %v984_v13  ;;  %vm779_vm12 = vcmp.lt.s32.totalorder %v778_v10, 2 }
 0x145   : > { %v867_v37 = vor.u32 4788187, %v866_v35  ;;  %vm1400_vm14 = vcmp.lt.s32.totalorder %v1399_v36, 0  ;;  %v870_v39 = vcvt.s32.f32 %v863_v34 }
 0x146   : > { %v756_v40 = vsel %vm1400_vm14, 0, %v1399_v36  ;;  %vm987_vm14 = vcmp.eq.s32.totalorder %v985_v20, 0 }
 0x147   : > { %v868_v38 = vand.u32 2147483647, %v867_v37  ;;  %v757_v42 = vsub.s32 32, %v756_v40  ;;  %v761_v43 = vsub.s32 4294967266, %v756_v40  ;;  %v758_v30 = vshll.u32 %v749_v17, %v756_v40 }
 0x149   : > { %v871_v29 = vmul.f32 %v870_v39, %v868_v38  ;;  %v759_v44 = vshrl.u32 %v741_v41, %v757_v42  ;;  %v762_v47 = vadd.s32 127, %v761_v43 }
 0x14b   : > { %v872_v49 = vxor.u32 2147483648, %v871_v29  ;;  %v760_v52 = vor.u32 %v759_v44, %v758_v30  ;;  %v763_v53 = vshll.u32 %v762_v47, 23 }
 0x14d   : > { %v873_v46 = vsel %vm790_vm15, %v872_v49, %v871_v29  ;;  %v764_v48 = vor.u32 4788187, %v763_v53  ;;  %v767_v51 = vcvt.s32.f32 %v760_v52  ;;  %vm990_vm15 = vcmp.eq.s32.totalorder %v985_v20, 2 }
 0x14e   : > { %v876_v45 = vsel %vm789_vm0, %v1746_v25, %v873_v46  ;;  %vm986_vm0 = vcmp.lt.s32.totalorder %v985_v20, 2 }
 0x14f   : > { %1551 = vcosq.f32 %v876_v45  ;;  %v765_v55 = vand.u32 2147483647, %v764_v48 }
 0x150   : > { %1553 = vsinq.f32 %v876_v45 }
 0x151   : > { %v768_v57 = vmul.f32 %v767_v51, %v765_v55 }
 0x153   : > { %v769_v59 = vxor.u32 2147483648, %v768_v57 }
 0x155   : > { %v770_v28 = vsel %vm687_vm1, %v769_v59, %v768_v57  ;;  %vm1143_vm1 = vcmask 130048  }
 0x156   : > { %v773_v63 = vsel %vm1805_vm2, %v1748_v27, %v770_v28  ;;  %vm1146_vm2 = vcmask 261120  }
 0x157   : > { %1555 = vcosq.f32 %v773_v63 }
 0x158   : > { %1557 = vsinq.f32 %v773_v63 }
 0x159   : > { %v1552_v1 = vpop.eup %1551 }
 0x15a   : > { %v1554_v2 = vpop.eup %1553  ;;  %v887_v3 = vxor.u32 2147483648, %v1552_v1 }
 0x15b   : > { %v884_v5 = vxor.u32 2147483648, %v1554_v2 }
 0x15c   : > { %v888_v33 = vsel %vm886_vm3, %v887_v3, %v1554_v2  ;;  %v1096_v12 = vsel %vm1094_vm8, %v887_v3, %v1554_v2  ;;  %vm1149_vm3 = vcmask 392192  }
 0x15d   : > { %v885_v50 = vsel %vm883_vm4, %v1552_v1, %v884_v5  ;;  %v1093_v11 = vsel %vm1091_vm7, %v1552_v1, %v884_v5  ;;  %vm1152_vm4 = vcmask 523264   ;;  %vm1161_vm7 = vcmask 916480  }
 0x15e   : > { %v889_v8 = vsel %vm882_vm5, %v885_v50, %v888_v33  ;;  %v1097_v17 = vsel %vm1090_vm9, %v1093_v11, %v1096_v12  ;;  %vm1155_vm5 = vcmask 654336  }
 0x15f   : > { %v1817_v9 = vsel %vm880_vm6, nan, %v889_v8  ;;  %v1826_v22 = vsel %vm880_vm6, nan, %v1097_v17  ;;  %vm1158_vm6 = vcmask 785408  }
 0x160   : > { %1121 = vrot.lane.b32.xlu1 %v1817_v9, %s1661_s4  ;;  %1103 = vrot.lane.b32.xlu0 %v1817_v9, %s1662_s5 }
 0x161   : > { %v1556_v14 = vpop.eup %1555 }
 0x162   : > { %v1558_v15 = vpop.eup %1557  ;;  %v784_v16 = vxor.u32 2147483648, %v1556_v14 }
 0x163   : > { %v781_v18 = vxor.u32 2147483648, %v1558_v15 }
 0x164   : > { %1127 = vrot.lane.b32.xlu1 %v1817_v9, %s1663_s6  ;;  %v785_v19 = vsel %vm783_vm10, %v784_v16, %v1558_v15  ;;  %v992_v31 = vsel %vm990_vm15, %v784_v16, %v1558_v15 }
 0x165   : > { %v782_v21 = vsel %vm780_vm11, %v1556_v14, %v781_v18  ;;  %v989_v26 = vsel %vm987_vm14, %v1556_v14, %v781_v18 }
 0x166   : > { %v786_v23 = vsel %vm779_vm12, %v782_v21, %v785_v19  ;;  %v993_v25 = vsel %vm986_vm0, %v989_v26, %v992_v31 }
 0x167   : > { %v1829_v24 = vsel %vm777_vm13, nan, %v786_v23  ;;  %v1838_v27 = vsel %vm777_vm13, nan, %v993_v25 }
 0x168   : > { %1182 = vrot.lane.b32.xlu1 %v1826_v22, %s1662_s5  ;;  %1101 = vrot.lane.b32.xlu0 %v1829_v24, %s1662_s5 }
 0x16c   : > { %1200 = vrot.lane.b32.xlu1 %v1826_v22, %s1661_s4  ;;  %1125 = vrot.lane.b32.xlu0 %v1829_v24, %s1663_s6 }
 0x170   : > { %1206 = vrot.lane.b32.xlu1 %v1826_v22, %s1663_s6  ;;  %1180 = vrot.lane.b32.xlu0 %v1838_v27, %s1662_s5 }
 0x174   : > { %1109 = vrot.lane.b32.xlu1 %v1817_v9, %s1664_s7  ;;  %1198 = vrot.lane.b32.xlu0 %v1838_v27, %s1661_s4 }
 0x178   : > { %1133 = vrot.lane.b32.xlu1 %v1817_v9, %s1665_s8  ;;  %1204 = vrot.lane.b32.xlu0 %v1838_v27, %s1663_s6  ;;  %s1668_s6 = smov [#allocation2]  }
 0x17c   : > { %1188 = vrot.lane.b32.xlu1 %v1826_v22, %s1664_s7  ;;  %1107 = vrot.lane.b32.xlu0 %v1829_v24, %s1664_s7 }
 0x180   : > { %1212 = vrot.lane.b32.xlu1 %v1826_v22, %s1665_s8  ;;  %1131 = vrot.lane.b32.xlu0 %v1829_v24, %s1665_s8 }
 0x184   : > { %1115 = vrot.lane.b32.xlu1 %v1817_v9, %s1666_s9  ;;  %1186 = vrot.lane.b32.xlu0 %v1838_v27, %s1664_s7  ;;  %s1563_s7 = sshll.u32 %s1668_s6, 4  ;;  %s1564_s7 = int_to_ptr.vmem [resolvable:$false] %s1563_s7 }
 0x185   : > { %p1566_p0 = scmp.lt.s32.totalorder %s1940_s24, %s1564_s7 }
 0x188   : > { %1139 = vrot.lane.b32.xlu1 %v1817_v9, %s1667_s10  ;;  %1210 = vrot.lane.b32.xlu0 %v1838_v27, %s1665_s8  ;;  %s1565_s8 = scalar_lea.vmem %s1564_s7, 1024 }
 0x18c   : > { %1194 = vrot.lane.b32.xlu1 %v1826_v22, %s1666_s9  ;;  %1113 = vrot.lane.b32.xlu0 %v1829_v24, %s1666_s9 }
 0x190   : > { %1119 = vrot.lane.b32.xlu1 %v1829_v24, %s1661_s4  ;;  %1137 = vrot.lane.b32.xlu0 %v1829_v24, %s1667_s10  ;;  %s1559_s4 = scalar_lea.vmem %s1940_s24, 512 }
 0x191   : > { %p1560_p11 = scmp.ne.s32.totalorder %s1940_s24, %s1559_s4  ;;  %p1567_p1 = scmp.lt.s32.totalorder %s1565_s8, %s1559_s4 }
 0x193   : > { %p1561_p12 = pnand %p1560_p11, %p1729_p5  ;;  %p1568_p2 = por %p1567_p1, %p1566_p0 }
 0x194   : > { %1218 = vrot.lane.b32.xlu1 %v1826_v22, %s1667_s10  ;;  %1192 = vrot.lane.b32.xlu0 %v1838_v27, %s1666_s9 }
 0x195   : > { %p1562_p13 = pneg %p1561_p12 }
 0x197   : > { %p1569_p3 = pnand %p1568_p2, %p1562_p13 }
 0x198   : > { %1216 = vrot.lane.b32.xlu0 %v1838_v27, %s1667_s10 }
 0x1d2   : > { %v1122_v32 = vpop.permute.xlu1 %1121  ;;  %v1104_v34 = vpop.permute.xlu0 %1103 }
 0x1d3   : > { %v1145_v47 = vsel %vm1143_vm1, %v1817_v9, %v1104_v34 }
 0x1d4   : > { %v1148_v52 = vsel %vm1146_vm2, %v1145_v47, %v1104_v34 }
 0x1d6   : > { %v1128_v35 = vpop.permute.xlu1 %1127 }
 0x1d7   : > { %v1165_v46 = vsel %vm1143_vm1, %v1122_v32, %v1128_v35 }
 0x1d8   : > { %v1167_v48 = vsel %vm1146_vm2, %v1165_v46, %v1128_v35 }
 0x1da   : > { %v1183_v36 = vpop.permute.xlu1 %1182  ;;  %v1102_v37 = vpop.permute.xlu0 %1101 }
 0x1db   : > { %v1223_v56 = vsel %vm1143_vm1, %v1826_v22, %v1183_v36  ;;  %v1144_v60 = vsel %vm1143_vm1, %v1829_v24, %v1102_v37 }
 0x1dc   : > { %v1225_v62 = vsel %vm1146_vm2, %v1223_v56, %v1183_v36  ;;  %v1147_v1 = vsel %vm1146_vm2, %v1144_v60, %v1102_v37 }
 0x1de   : > { %v1201_v38 = vpop.permute.xlu1 %1200  ;;  %v1864_v39 = vpop.permute.xlu0 %1125 }
 0x1e2   : > { %v1207_v40 = vpop.permute.xlu1 %1206  ;;  %v1181_v41 = vpop.permute.xlu0 %1180 }
 0x1e3   : > { %v1237_v8 = vsel %vm1143_vm1, %v1201_v38, %v1207_v40  ;;  %v1222_v13 = vsel %vm1143_vm1, %v1838_v27, %v1181_v41 }
 0x1e4   : > { %v1239_v16 = vsel %vm1146_vm2, %v1237_v8, %v1207_v40  ;;  %v1224_v19 = vsel %vm1146_vm2, %v1222_v13, %v1181_v41 }
 0x1e6   : > { %v1110_v42 = vpop.permute.xlu1 %1109  ;;  %v1866_v43 = vpop.permute.xlu0 %1198 }
 0x1e7   : > { %v1151_v54 = vsel %vm1149_vm3, %v1148_v52, %v1110_v42 }
 0x1e8   : > { %v1154_v55 = vsel %vm1152_vm4, %v1151_v54, %v1110_v42 }
 0x1ea   : > { %v1134_v29 = vpop.permute.xlu1 %1133  ;;  %v1868_v30 = vpop.permute.xlu0 %1204 }
 0x1eb   : > { %v1169_v57 = vsel %vm1149_vm3, %v1167_v48, %v1134_v29  ;;  %v1236_v31 = vsel %vm1143_vm1, %v1866_v43, %v1868_v30 }
 0x1ec   : > { %v1171_v63 = vsel %vm1152_vm4, %v1169_v57, %v1134_v29 }
 0x1ee   : > { %v1189_v44 = vpop.permute.xlu1 %1188  ;;  %v1108_v49 = vpop.permute.xlu0 %1107 }
 0x1ef   : > { %v1227_v2 = vsel %vm1149_vm3, %v1225_v62, %v1189_v44  ;;  %v1150_v5 = vsel %vm1149_vm3, %v1147_v1, %v1108_v49 }
 0x1f0   : > { %v1229_v50 = vsel %vm1152_vm4, %v1227_v2, %v1189_v44  ;;  %v1153_v10 = vsel %vm1152_vm4, %v1150_v5, %v1108_v49 }
 0x1f2   : > { %v1213_v53 = vpop.permute.xlu1 %1212  ;;  %v1132_v45 = vpop.permute.xlu0 %1131 }
 0x1f3   : > { %v1241_v20 = vsel %vm1149_vm3, %v1239_v16, %v1213_v53 }
 0x1f4   : > { %v1243_v35 = vsel %vm1152_vm4, %v1241_v20, %v1213_v53 }
 0x1f6   : > { %v1116_v51 = vpop.permute.xlu1 %1115  ;;  %v1187_v58 = vpop.permute.xlu0 %1186 }
 0x1f7   : > { %v1157_v59 = vsel %vm1155_vm5, %v1154_v55, %v1116_v51  ;;  %v1226_v25 = vsel %vm1149_vm3, %v1224_v19, %v1187_v58 }
 0x1f8   : > { %v1160_v28 = vsel %vm1158_vm6, %v1157_v59, %v1116_v51  ;;  %v1228_v40 = vsel %vm1152_vm4, %v1226_v25, %v1187_v58 }
 0x1f9   : > { %v1163_v61 = vsel %vm1161_vm7, %v1160_v28, %v1122_v32 }
 0x1fa   : > { %1252 = vst [vmem:[%s1893_s19 + $0x10] sm:$0xff] %v1163_v61  ;;  %v1140_v0 = vpop.permute.xlu1 %1139  ;;  %v1211_v3 = vpop.permute.xlu0 %1210 }
 0x1fb   : > { %v1173_v4 = vsel %vm1155_vm5, %v1171_v63, %v1140_v0 }
 0x1fc   : > { %v1175_v33 = vsel %vm1158_vm6, %v1173_v4, %v1140_v0 }
 0x1fd   : > { %v1177_v6 = vsel %vm1161_vm7, %v1175_v33, %v1817_v9 }
 0x1fe   : > { %1253 = vst [vmem:[%s1893_s19 + $0x18] sm:$0xff] %v1177_v6  ;;  %v1195_v7 = vpop.permute.xlu1 %1194  ;;  %v1114_v11 = vpop.permute.xlu0 %1113 }
 0x1ff   : > { %v1231_v12 = vsel %vm1155_vm5, %v1229_v50, %v1195_v7  ;;  %v1156_v14 = vsel %vm1155_vm5, %v1153_v10, %v1114_v11 }
 0x200   : > { %v1233_v15 = vsel %vm1158_vm6, %v1231_v12, %v1195_v7  ;;  %v1159_v17 = vsel %vm1158_vm6, %v1156_v14, %v1114_v11 }
 0x201   : > { %v1235_v9 = vsel %vm1161_vm7, %v1233_v15, %v1201_v38  ;;  %v1238_v38 = vsel %vm1146_vm2, %v1236_v31, %v1868_v30 }
 0x202   : > { %1256 = vst [vmem:[%s1917_s20 + $0x10] sm:$0xff] %v1235_v9  ;;  %v1120_v18 = vpop.permute.xlu1 %1119  ;;  %v1138_v21 = vpop.permute.xlu0 %1137  ;;  %v1240_v29 = vsel %vm1149_vm3, %v1238_v38, %v1211_v3 }
 0x203   : > { %v1162_v23 = vsel %vm1161_vm7, %v1159_v17, %v1120_v18  ;;  %v1164_v26 = vsel %vm1143_vm1, %v1120_v18, %v1864_v39  ;;  %v1242_v54 = vsel %vm1152_vm4, %v1240_v29, %v1211_v3 }
 0x204   : > { %v1166_v32 = vsel %vm1146_vm2, %v1164_v26, %v1864_v39  ;;  %1250 = vst [vmem:[%s1893_s19] sm:$0xff] %v1162_v23 }
 0x205   : > { %v1168_v34 = vsel %vm1149_vm3, %v1166_v32, %v1132_v45 }
 0x206   : > { %v1170_v36 = vsel %vm1152_vm4, %v1168_v34, %v1132_v45  ;;  %v1219_v37 = vpop.permute.xlu1 %1218  ;;  %v1193_v41 = vpop.permute.xlu0 %1192 }
 0x207   : > { %v1172_v39 = vsel %vm1155_vm5, %v1170_v36, %v1138_v21  ;;  %v1245_v42 = vsel %vm1155_vm5, %v1243_v35, %v1219_v37  ;;  %v1230_v30 = vsel %vm1155_vm5, %v1228_v40, %v1193_v41 }
 0x208   : > { %v1174_v44 = vsel %vm1158_vm6, %v1172_v39, %v1138_v21  ;;  %v1247_v47 = vsel %vm1158_vm6, %v1245_v42, %v1219_v37  ;;  %v1232_v52 = vsel %vm1158_vm6, %v1230_v30, %v1193_v41 }
 0x209   : > { %v1176_v49 = vsel %vm1161_vm7, %v1174_v44, %v1829_v24  ;;  %v1249_v53 = vsel %vm1161_vm7, %v1247_v47, %v1826_v22  ;;  %v1234_v46 = vsel %vm1161_vm7, %v1232_v52, %v1866_v43 }
 0x20a   : > { %1251 = vst [vmem:[%s1893_s19 + $0x8] sm:$0xff] %v1176_v49  ;;  %1257 = vst [vmem:[%s1917_s20 + $0x18] sm:$0xff] %v1249_v53  ;;  %v1217_v45 = vpop.permute.xlu0 %1216 }
 0x20b   : > { %1254 = vst [vmem:[%s1917_s20] sm:$0xff] %v1234_v46 }
 0x20c   : > { %1572 = shalt.err (!%p1569_p3)
}
 0x20d   : > { %s1573_s9 = scalar_lea.hbm %s1953_s28, 512  ;;  %s1577_s19 = scalar_lea.hbm %s2056_s2, 1536 }
 0x20e   : > { %p1574_p4 = scmp.ne.s32.totalorder %s1953_s28, %s1573_s9  ;;  %p1578_p9 = scmp.lt.u32.totalorder %s1953_s28, %s2056_s2 }
 0x20f   : > { %p1579_p10 = scmp.lt.u32.totalorder %s1577_s19, %s1573_s9  ;;  %p1581_p12 = scmp.lt.u32.totalorder %s1573_s9, %s1953_s28 }
 0x210   : > { %p1575_p7 = pnand %p1574_p4, %p1729_p5 }
 0x211   : > { %p1580_p11 = por %p1579_p10, %p1578_p9 }
 0x212   : > { %p1576_p8 = pneg %p1575_p7 }
 0x213   : > { %p1582_p13 = por %p1581_p12, %p1580_p11 }
 0x215   : > { %p1583_p0 = pnand %p1582_p13, %p1576_p8 }
 0x217   : > { %1586 = shalt.err (!%p1583_p0)
}
 0x218   : > { %s1669_s4 = smov 256   ;;  %v1244_v22 = vsel %vm1155_vm5, %v1242_v54, %v1217_v45  ;;  %s2005_s8 = scalar_lea.hbm %s2057_s3, %s1424_s25 }
 0x219   : > { %1493 = dma.vmem_to_hbm [thread:$0]  (%p1729_p5), %s1940_s24, 512, %s1953_s28, %s1259_s30, %s1669_s4, %s1669_s4, %s1662_s5   ;;  %v1246_v24 = vsel %vm1158_vm6, %v1244_v22, %v1217_v45 }
 0x21a   : > { %v1248_v43 = vsel %vm1161_vm7, %v1246_v24, %v1838_v27  ;;  %s1264_s24 = scalar_lea.sflag [#allocation5], %s1873_s11  ;;  %s1587_s28 = scalar_lea.vmem %s1997_s29, 512 }
 0x21b   : > { %1255 = vst [vmem:[%s1917_s20 + $0x8] sm:$0xff] %v1248_v43  ;;  %p1588_p1 = scmp.ne.s32.totalorder %s1997_s29, %s1587_s28  ;;  %s1670_s30 = smov [#allocation4]  }
 0x21c   : > { %s1591_s9 = sshll.u32 %s1670_s30, 4  ;;  %s1592_s9 = int_to_ptr.vmem [resolvable:$false] %s1591_s9 }
 0x21d   : > { %p1589_p2 = pnand %p1588_p1, %p1729_p5  ;;  %s1593_s10 = scalar_lea.vmem %s1592_s9, 1024 }
 0x21e   : > { %p1594_p4 = scmp.lt.s32.totalorder %s1997_s29, %s1592_s9  ;;  %p1595_p7 = scmp.lt.s32.totalorder %s1593_s10, %s1587_s28 }
 0x21f   : > { %p1590_p3 = pneg %p1589_p2 }
 0x220   : > { %p1596_p8 = por %p1595_p7, %p1594_p4 }
 0x222   : > { %p1597_p9 = pnand %p1596_p8, %p1590_p3 }
 0x224   : > { %1600 = shalt.err (!%p1597_p9)
}
 0x225   : > { %s1601_s16 = scalar_lea.hbm %s2005_s8, 512  ;;  %s1605_s17 = scalar_lea.hbm %s2057_s3, 1536 }
 0x226   : > { %p1602_p10 = scmp.ne.s32.totalorder %s2005_s8, %s1601_s16  ;;  %p1606_p13 = scmp.lt.u32.totalorder %s2005_s8, %s2057_s3 }
 0x227   : > { %p1607_p0 = scmp.lt.u32.totalorder %s1605_s17, %s1601_s16  ;;  %p1609_p2 = scmp.lt.u32.totalorder %s1601_s16, %s2005_s8 }
 0x228   : > { %p1603_p11 = pnand %p1602_p10, %p1729_p5 }
 0x229   : > { %p1608_p1 = por %p1607_p0, %p1606_p13 }
 0x22a   : > { %p1604_p12 = pneg %p1603_p11 }
 0x22b   : > { %p1610_p3 = por %p1609_p2, %p1608_p1 }
 0x22d   : > { %p1611_p4 = pnand %p1610_p3, %p1604_p12 }
 0x22f   : > { %1614 = shalt.err (!%p1611_p4)
}
 0x230   : > { %1494 = dma.vmem_to_hbm [thread:$0]  (%p1729_p5), %s1997_s29, 512, %s2005_s8, %s1264_s24, %s1669_s4, %s1669_s4, %s1662_s5  }
 0x231 PF: > { %p1504_p7 = scmp.ge.s32.totalorder %s1653_s15, 2  ;;  %s1310_s27 = sand.u32 1, %s1641_s12  }
 0x232   : > { %s1311_s6 = scalar_lea.sflag [#allocation3], %s1310_s27 }
 0x233   : > { %p1498_p8 = pnand %p1504_p7, %p1733_p6 }
 0x235   : > { %1632 = dma.done.wait (!%p1498_p8), %s1311_s6, 512  }
 0x236   : > { %1634 = vsyncadd (!%p1498_p8), %s1311_s6, 4294966784  ;;  %s1320_s22 = scalar_lea.sflag [#allocation5], %s1310_s27 }
 0x237   : > { %1636 = dma.done.wait (!%p1498_p8), %s1320_s22, 512  }
 0x238   : > { %1638 = vsyncadd (!%p1498_p8), %s1320_s22, 4294966784  ;;  %p17_p5 = scmp.ge.s32.totalorder %s1716_s18, 5   ;;  %s2062_s12 = smov %s1645_s13 }
 0x239   : > { %s2063_s13 = smov %s1649_s14  ;;  %s2064_s14 = smov %s1727_s21 }
 0x23a   : > { %s2065_s15 = smov %s1716_s18  ;;  %19 = sbr.rel (!%p17_p5) target bundleno = 5 (0x5), region = 80 }
 0x241   :  { %1325 = vsyncpa [#allocation3], 1 }
 0x242   :  { %1327 = vsyncpa [#allocation3 + $0x1], 1 }
 0x243   :  { %1328 = vsyncpa [#allocation5], 1 }
 0x244   :  { %1330 = vsyncpa [#allocation5 + $0x1], 1 }

</bundles_post_ra>
